<compile_context>
chip_gen: v5e
topology: v5e:2x2
jax: 0.10.0
libtpu: 0.0.40
codegen_flags: <defaults>
</compile_context>

<pallas_src>
import jax
import jax.numpy as jnp
from jax.experimental import pallas as pl
from jax.experimental.pallas import tpu as pltpu


# ---------------------------------------------------------------------------
# Kernels
# ---------------------------------------------------------------------------

def _clip_kernel(x_ref, t_ref, o_ref):
    # torch.clamp(x, -t, t) == min(max(x, -t), t); matches clamp's behavior
    # when t < 0 (result = t) and propagates NaNs in x.
    t = t_ref[...]                                               # (TM, TN)
    o_ref[...] = jnp.minimum(jnp.maximum(x_ref[...], -t), t)    # (1, TM, TN) or (TM, TN)


def _clip_scalar_kernel(t_ref, x_ref, o_ref):
    # Scalar threshold lives in SMEM; no full-size threshold array in HBM.
    t = t_ref[0]
    o_ref[...] = jnp.minimum(jnp.maximum(x_ref[...], -t), t)


# ---------------------------------------------------------------------------
# pallas_call wrappers
# ---------------------------------------------------------------------------

_LANE_CANDIDATES = (1024, 512, 256, 128)


def _tm_target() -> int:
    # (TM, 1024) f32 blocks: TM=512 -> 2 MiB, TM=1024 -> 4 MiB per array.
    # Double-buffered x + t + out = 12 MiB / 24 MiB of scoped VMEM.
    # 24 MiB fits the default scoped limit on v6e / v7x (32 MiB) but not on
    # v5e (16 MiB), so only bump the block where it is free.
    try:
        kind = jax.devices()[0].device_kind.lower()
    except Exception:
        return 512
    if ("v6" in kind) or ("v7" in kind) or ("7x" in kind):
        return 1024
    return 512


def _clip_pallas(x3, t2, tm):
    """x3: (R, M, TN); t2: (M, TN). Clamp x3 to [-t2, t2]; t2 shared over R."""
    R, M, TN = x3.shape
    tm = min(tm, M)
    return pl.pallas_call(
        _clip_kernel,
        out_shape=jax.ShapeDtypeStruct((R, M, TN), x3.dtype),
        grid=(pl.cdiv(M, tm), R),                 # ragged last row-block is masked
        in_specs=[
            pl.BlockSpec((1, tm, TN), lambda i, r: (r, i, 0)),
            # Threshold ignores the (innermost / fastest) R axis, so its block
            # index is unchanged between consecutive grid steps and Pallas
            # reuses the resident block for the imaginary half (no re-DMA).
            pl.BlockSpec((tm, TN), lambda i, r: (i, 0)),
        ],
        out_specs=pl.BlockSpec((1, tm, TN), lambda i, r: (r, i, 0)),
        compiler_params=pltpu.CompilerParams(
            dimension_semantics=("parallel", "arbitrary")),
    )(x3, t2)


def _clip_pallas_scalar(x2, t1, tm):
    """x2: (M, TN); t1: (1,) scalar threshold in SMEM. Clamp x2 to [-t, t]."""
    M, TN = x2.shape
    tm = min(tm, M)
    return pl.pallas_call(
        _clip_scalar_kernel,
        out_shape=jax.ShapeDtypeStruct((M, TN), x2.dtype),
        grid=(pl.cdiv(M, tm),),
        in_specs=[
            pl.BlockSpec(memory_space=pltpu.MemorySpace.SMEM),
            pl.BlockSpec((tm, TN), lambda i: (i, 0)),
        ],
        out_specs=pl.BlockSpec((tm, TN), lambda i: (i, 0)),
        compiler_params=pltpu.CompilerParams(dimension_semantics=("parallel",)),
    )(t1, x2)


# ---------------------------------------------------------------------------
# Flattening helpers
# ---------------------------------------------------------------------------

def _pick_lanes(n):
    for tn in _LANE_CANDIDATES:
        if n % tn == 0:
            return tn
    return None


def _clip_rows(x2, t1, tm):
    """x2: (R, N) rows clamped against the shared full-size threshold t1: (N,)."""
    R, N = x2.shape
    TN = _pick_lanes(N)
    if TN is None:
        # TODO(synk): rare ragged-size fallback still pays a pad + slice pass;
        # a masked ragged lane block would keep it at the 3-pass roofline.
        TN = 1024
        pad = (-N) % TN
        x2 = jnp.pad(x2, ((0, 0), (0, pad)))
        t1 = jnp.pad(t1, (0, pad))
    Np = x2.shape[1]
    M = Np // TN
    out = _clip_pallas(x2.reshape(R, M, TN), t1.reshape(M, TN), tm).reshape(R, Np)
    return out[:, :N] if Np != N else out


def _clip_rows_scalar(x1, t_scalar, tm):
    """x1: (N,) flat data; t_scalar: size-1 threshold (SMEM fast path)."""
    (N,) = x1.shape
    TN = _pick_lanes(N)
    if TN is None:
        TN = 1024
        pad = (-N) % TN
        x1 = jnp.pad(x1, (0, pad))
    Np = x1.shape[0]
    M = Np // TN
    t1 = jnp.reshape(t_scalar, (1,)).astype(x1.dtype)
    out = _clip_pallas_scalar(x1.reshape(M, TN), t1, tm).reshape(Np)
    return out[:N] if Np != N else out


# ---------------------------------------------------------------------------
# Public entry point (ClipAct.forward equivalent)
# ---------------------------------------------------------------------------

@jax.jit
def clip_act(x, threshold):
    """JAX/Pallas equivalent of ClipAct.forward(x, threshold)."""
    threshold = jnp.asarray(threshold)
    tm = _tm_target()
    scalar_t = threshold.size == 1

    if jnp.iscomplexobj(x):
        # TODO(synk): jax.lax.bitcast_convert_type rejects complex dtypes, so a
        # zero-copy complex64<->f32 reinterpret is unavailable; the planar
        # split/recombine below is the remaining unavoidable HBM cost.
        xr = jnp.stack([jnp.real(x), jnp.imag(x)], axis=0)      # (2, *x.shape) planar
        if scalar_t:
            out = _clip_rows_scalar(xr.reshape(-1), threshold.astype(xr.dtype), tm)
        else:
            t = jnp.broadcast_to(threshold, x.shape).astype(xr.dtype)
            out = _clip_rows(xr.reshape(2, -1), t.reshape(-1), tm)
        out = out.reshape((2,) + x.shape)
        return jax.lax.complex(out[0], out[1]).astype(x.dtype)

    if scalar_t:
        out = _clip_rows_scalar(x.reshape(-1), threshold.astype(x.dtype), tm)
        return out.reshape(x.shape)
    t = jnp.broadcast_to(threshold, x.shape).astype(x.dtype)
    out = _clip_rows(x.reshape(1, -1), t.reshape(-1), tm)
    return out.reshape(x.shape)


# ---------------------------------------------------------------------------
# Reference + self-test
# ---------------------------------------------------------------------------

def _reference(x, threshold):
    if jnp.iscomplexobj(x):
        t = jnp.broadcast_to(threshold, x.shape).astype(jnp.float32)
        re = jnp.minimum(jnp.maximum(jnp.real(x), -t), t)
        im = jnp.minimum(jnp.maximum(jnp.imag(x), -t), t)
        return jax.lax.complex(re, im).astype(x.dtype)
    t = jnp.broadcast_to(threshold, x.shape).astype(x.dtype)
    return jnp.minimum(jnp.maximum(x, -t), t)


if __name__ == "__main__":
    key = jax.random.PRNGKey(0)
    k1, k2, k3, k4, k5 = jax.random.split(key, 5)

    B, C, H, W = 2, 4, 16, 16

    # Complex case: x complex64, full-size (elementwise) threshold.
    xr = jax.random.normal(k1, (B, C, H, W), dtype=jnp.float32)
    xi = jax.random.normal(k2, (B, C, H, W), dtype=jnp.float32)
    x_c = jax.lax.complex(xr, xi)
    thr_c = jnp.abs(jax.random.normal(k3, (B, C, H, W), dtype=jnp.float32)) * 0.5

    out_c = jax.block_until_ready(clip_act(x_c, thr_c))
    ref_c = _reference(x_c, thr_c)
    assert out_c.shape == x_c.shape and out_c.dtype == x_c.dtype
    assert jnp.allclose(out_c, ref_c, atol=1e-6)

    # Complex case with a scalar threshold (SMEM fast path).
    thr_s = jnp.float32(0.3)
    out_cs = jax.block_until_ready(clip_act(x_c, thr_s))
    ref_cs = _reference(x_c, thr_s)
    assert out_cs.shape == x_c.shape and out_cs.dtype == x_c.dtype
    assert jnp.allclose(out_cs, ref_cs, atol=1e-6)

    # Real case, full-size threshold.
    x_r = jax.random.normal(k4, (B, C, H, W), dtype=jnp.float32)
    thr_r = jnp.abs(jax.random.normal(k5, (B, C, H, W), dtype=jnp.float32)) * 0.5
    out_r = jax.block_until_ready(clip_act(x_r, thr_r))
    ref_r = _reference(x_r, thr_r)
    assert out_r.shape == x_r.shape and out_r.dtype == x_r.dtype
    assert jnp.allclose(out_r, ref_r, atol=1e-6)

    # Real case with a scalar threshold (SMEM fast path).
    out_rs = jax.block_until_ready(clip_act(x_r, thr_s))
    ref_rs = _reference(x_r, thr_s)
    assert out_rs.shape == x_r.shape and out_rs.dtype == x_r.dtype
    assert jnp.allclose(out_rs, ref_rs, atol=1e-6)

    print("KERNEL_OK")
</pallas_src>

<mosaic_0001>
module attributes {stable_mosaic.version = 11 : i64} {
  func.func @_clip_kernel(%arg0: i32, %arg1: i32, %arg2: memref<1x2x1024xf32, #tpu.memory_space<vmem>>, %arg3: memref<2x1024xf32, #tpu.memory_space<vmem>>, %arg4: memref<1x2x1024xf32, #tpu.memory_space<vmem>>) attributes {dimension_semantics = [#tpu.dimension_semantics<parallel>, #tpu.dimension_semantics<arbitrary>], iteration_bounds = array<i64: 1, 2>, scalar_prefetch = 0 : i64, scratch_operands = 0 : i64, tpu.core_type = #tpu.core_type<tc>, window_params = [{transform_indices = @transform_0, window_bounds = array<i64: 1, 2, 1024>}, {transform_indices = @transform_1, window_bounds = array<i64: 2, 1024>}, {transform_indices = @transform_2, window_bounds = array<i64: 1, 2, 1024>}]} {
    %c0 = arith.constant 0 : index
    %c0_0 = arith.constant 0 : index
    %0 = vector.load %arg3[%c0, %c0_0] : memref<2x1024xf32, #tpu.memory_space<vmem>>, vector<2x1024xf32>
    %c0_1 = arith.constant 0 : index
    %c0_2 = arith.constant 0 : index
    %c0_3 = arith.constant 0 : index
    %1 = vector.load %arg2[%c0_1, %c0_2, %c0_3] : memref<1x2x1024xf32, #tpu.memory_space<vmem>>, vector<1x2x1024xf32>
    %cst = arith.constant 0.000000e+00 : f32
    %2 = vector.broadcast %cst : f32 to vector<2x1024xf32>
    %3 = arith.subf %2, %0 : vector<2x1024xf32>
    %4 = vector.shape_cast %3 : vector<2x1024xf32> to vector<1x2x1024xf32>
    %5 = arith.maximumf %1, %4 : vector<1x2x1024xf32>
    %6 = vector.shape_cast %0 : vector<2x1024xf32> to vector<1x2x1024xf32>
    %7 = arith.minimumf %5, %6 : vector<1x2x1024xf32>
    %c0_4 = arith.constant 0 : index
    %c0_5 = arith.constant 0 : index
    %c0_6 = arith.constant 0 : index
    %8 = vector.load %arg4[%c0_4, %c0_5, %c0_6] : memref<1x2x1024xf32, #tpu.memory_space<vmem>>, vector<1x2x1024xf32>
    tpu.vector_store %arg4[%c0_4, %c0_5, %c0_6], %7 {strides = array<i32>} : memref<1x2x1024xf32, #tpu.memory_space<vmem>>, vector<1x2x1024xf32>,
    return
  }
  func.func @transform_0(%arg0: i32, %arg1: i32) -> (i32, i32, i32) {
    %c0_i32 = arith.constant 0 : i32
    %c0_i32_0 = arith.constant 0 : i32
    return %arg1, %arg0, %c0_i32 : i32, i32, i32
  }
  func.func @transform_1(%arg0: i32, %arg1: i32) -> (i32, i32) {
    %c0_i32 = arith.constant 0 : i32
    %c0_i32_0 = arith.constant 0 : i32
    return %arg0, %c0_i32 : i32, i32
  }
  func.func @transform_2(%arg0: i32, %arg1: i32) -> (i32, i32, i32) {
    %c0_i32 = arith.constant 0 : i32
    %c0_i32_0 = arith.constant 0 : i32
    return %arg1, %arg0, %c0_i32 : i32, i32, i32
  }
}

</mosaic_0001>

<bundles_post_ra>
// kernel: custom-call.1
= control target key start
LH: loop header
LB: loop body
LE: loop exit
PB: predicated region body
PF: predicated region fallthrough
CT: control target
= control target key end

     0   :  { %s56_s0 = inlined_call_operand.hbm [shape: c64[2,4,16,16], index: 0, kind: input, shape index: {}]   ;;  %s57_s1 = inlined_call_operand.vmem [shape: f32[2,4,16,16], index: 1, kind: output, shape index: {}]  }
   0x1   :  { %s2_s8 = scalar_lea.hbm %s56_s0, 128 }
   0x2   :  { %3 = vsyncpa [#allocation0], 0  ;;  %s5_s9 = sshll.u32 %s2_s8, 4  ;;  %s7_s12 = sshll.u32 %s57_s1, 4  ;;  %s6_s9 = int_to_ptr.hbm [resolvable:$true] %s5_s9  ;;  %s8_s12 = int_to_ptr.vmem [resolvable:$true] %s7_s12 }
   0x3   :  { %10 = dma.hbm_to_vmem [thread:$0]  %s6_s9, 2048, %s8_s12, [#allocation0] }
   0x4   :  { %38 = dma.done.wait [#allocation0], 2048  }
   0x5   :  { %39 = vsyncadd [#allocation0], 4294965248 }
   0x6   :  { %13 = vsyncpa [#allocation0], 1 }

// kernel: custom-call
= control target key start
LH: loop header
LB: loop body
LE: loop exit
PB: predicated region body
PF: predicated region fallthrough
CT: control target
= control target key end

     0   :  { %2 = vsyncpa [#allocation0], 0  ;;  %s55_s0 = inlined_call_operand.hbm [shape: c64[2,4,16,16], index: 0, kind: input, shape index: {}]   ;;  %s56_s1 = inlined_call_operand.vmem [shape: f32[2,4,16,16], index: 1, kind: output, shape index: {}]  }
   0x1   :  { %s4_s8 = sshll.u32 %s55_s0, 4  ;;  %s6_s11 = sshll.u32 %s56_s1, 4  ;;  %s5_s8 = int_to_ptr.hbm [resolvable:$true] %s4_s8  ;;  %s7_s11 = int_to_ptr.vmem [resolvable:$true] %s6_s11 }
   0x2   :  { %9 = dma.hbm_to_vmem [thread:$0]  %s5_s8, 2048, %s7_s11, [#allocation0] }
   0x3   :  { %37 = dma.done.wait [#allocation0], 2048  }
   0x4   :  { %38 = vsyncadd [#allocation0], 4294965248 }
   0x5   :  { %12 = vsyncpa [#allocation0], 1 }

// kernel: squeeze.2
= control target key start
LH: loop header
LB: loop body
LE: loop exit
PB: predicated region body
PF: predicated region fallthrough
CT: control target
= control target key end

     0   :  { %vm91_vm0 = vcmask 1047556   ;;  %s321_s22 = smov 112   ;;  %s322_s23 = smov 80   ;;  %vm35_vm1 = vcmask 130048   ;;  %s551_s0 = inlined_call_operand.vmem [shape: f32[1,2,1024], index: 0, kind: input, shape index: {}]   ;;  %s552_s1 = inlined_call_operand.vmem [shape: f32[2,4,16,16], index: 1, kind: output, shape index: {}]  }
   0x1   :  { %v267_v0 = vld [vmem:[%s551_s0 + $0x6] sm:$0x3]  ;;  %v268_v1 = vld [vmem:[%s551_s0 + $0x4] sm:$0x3]  ;;  %v269_v2 = vld [vmem:[%s551_s0 + $0x2] sm:$0x3] }
   0x2   :  { %23 = vst [vmem:[#allocation0 + $0x18] sm:$0x3] %v267_v0  ;;  %v32_v3 = vld [vmem:[%s551_s0] sm:$0x3]  ;;  %v263_v4 = vld [vmem:[%s551_s0 + $0xe] sm:$0x3] }
   0x3   :  { %27 = vst [vmem:[#allocation0 + $0x10] sm:$0x3] %v268_v1  ;;  %v264_v5 = vld [vmem:[%s551_s0 + $0xc] sm:$0x3]  ;;  %v265_v6 = vld [vmem:[%s551_s0 + $0xa] sm:$0x3] }
   0x4   :  { %31 = vst [vmem:[#allocation0 + $0x8] sm:$0x3] %v269_v2  ;;  %v266_v7 = vld [vmem:[%s551_s0 + $0x8] sm:$0x3]  ;;  %s320_s0 = smov 96   ;;  %s323_s24 = smov 64  }
   0x5   :  { %33 = vst [vmem:[#allocation0] sm:$0x3] %v32_v3  ;;  %s324_s25 = smov 32   ;;  %s325_s26 = smov 48  }
   0x6   :  { %7 = vst [vmem:[#allocation0 + $0x38] sm:$0x3] %v263_v4  ;;  %s326_s27 = smov 16  }
   0x7   :  { %11 = vst [vmem:[#allocation0 + $0x30] sm:$0x3] %v264_v5 }
   0x8   :  { %15 = vst [vmem:[#allocation0 + $0x28] sm:$0x3] %v265_v6 }
   0x9   :  { %19 = vst [vmem:[#allocation0 + $0x20] sm:$0x3] %v266_v7  ;;  %v54_v63 = vld [vmem:[#allocation0 + $0x18] sm:$0x3]  }
   0xa   :  { %v47_v62 = vld [vmem:[#allocation0 + $0x10] sm:$0x3]   ;;  %275 = vst.msk [vmem:[%s552_s1 + $0x18] sm:$0x1] %vm35_vm1, %v54_v63  }
   0xb   :  { %v40_v59 = vld [vmem:[#allocation0 + $0x8] sm:$0x3]   ;;  %273 = vst.msk [vmem:[%s552_s1 + $0x10] sm:$0x1] %vm35_vm1, %v47_v62  }
   0xc   :  { %v113_v8 = vld [vmem:[#allocation0] ss:$8 sm:$0xf]   ;;  %v115_v9 = vld [vmem:[#allocation0 - $0x1f] ss:$8 sm:$0xf0]  }
   0xd   :  { %v117_v10 = vsel %vm91_vm0, %v115_v9, %v113_v8  ;;  %v88_v11 = vld [vmem:[#allocation0] ss:$8 sm:$0xf]   ;;  %v90_v12 = vld [vmem:[#allocation0 - $0x1f] ss:$8 sm:$0xf0]  }
   0xe   :  { %118 = vrot.lane.b32.xlu1 %v117_v10, %s320_s0  ;;  %v92_v13 = vsel %vm91_vm0, %v90_v12, %v88_v11  ;;  %v138_v20 = vld [vmem:[#allocation0] ss:$8 sm:$0xf]   ;;  %v140_v21 = vld [vmem:[#allocation0 - $0x1f] ss:$8 sm:$0xf0]  }
   0xf   :  { %93 = vrot.lane.b32.xlu0 %v92_v13, %s321_s22  ;;  %v142_v22 = vsel %vm91_vm0, %v140_v21, %v138_v20  ;;  %v163_v27 = vld [vmem:[#allocation0] ss:$8 sm:$0xf]   ;;  %v165_v28 = vld [vmem:[#allocation0 - $0x1f] ss:$8 sm:$0xf0]  }
  0x10   :  { %v126_v14 = vld [vmem:[#allocation0 + $0x20] ss:$8 sm:$0xf]   ;;  %v128_v15 = vld [vmem:[#allocation0 + $0x1] ss:$8 sm:$0xf0]   ;;  %143 = vrot.lane.b32.xlu2 %v142_v22, %s322_s23  ;;  %v167_v31 = vsel %vm91_vm0, %v165_v28, %v163_v27 }
  0x11   :  { %v101_v16 = vld [vmem:[#allocation0 + $0x20] ss:$8 sm:$0xf]   ;;  %v103_v17 = vld [vmem:[#allocation0 + $0x1] ss:$8 sm:$0xf0]   ;;  %v130_v18 = vsel %vm91_vm0, %v128_v15, %v126_v14 }
  0x12   :  { %v105_v19 = vsel %vm91_vm0, %v103_v17, %v101_v16  ;;  %v176_v23 = vld [vmem:[#allocation0 + $0x20] ss:$8 sm:$0xf]   ;;  %v178_v24 = vld [vmem:[#allocation0 + $0x1] ss:$8 sm:$0xf0]  }
  0x13   :  { %v151_v25 = vld [vmem:[#allocation0 + $0x20] ss:$8 sm:$0xf]   ;;  %v153_v26 = vld [vmem:[#allocation0 + $0x1] ss:$8 sm:$0xf0]   ;;  %v180_v29 = vsel %vm91_vm0, %v178_v24, %v176_v23 }
  0x14   :  { %v155_v30 = vsel %vm91_vm0, %v153_v26, %v151_v25  ;;  %v213_v32 = vld [vmem:[#allocation0] ss:$8 sm:$0xf]   ;;  %v215_v33 = vld [vmem:[#allocation0 - $0x1f] ss:$8 sm:$0xf0]  }
  0x15   :  { %v188_v34 = vld [vmem:[#allocation0] ss:$8 sm:$0xf]   ;;  %v190_v35 = vld [vmem:[#allocation0 - $0x1f] ss:$8 sm:$0xf0]   ;;  %v217_v38 = vsel %vm91_vm0, %v215_v33, %v213_v32 }
  0x16   :  { %131 = vrot.lane.b32.xlu1 %v130_v18, %s320_s0  ;;  %v201_v36 = vld [vmem:[#allocation0 + $0x20] ss:$8 sm:$0xf]   ;;  %v203_v37 = vld [vmem:[#allocation0 + $0x1] ss:$8 sm:$0xf0]   ;;  %v192_v39 = vsel %vm91_vm0, %v190_v35, %v188_v34 }
  0x17   :  { %106 = vrot.lane.b32.xlu0 %v105_v19, %s321_s22  ;;  %v205_v40 = vsel %vm91_vm0, %v203_v37, %v201_v36  ;;  %v251_v41 = vld [vmem:[#allocation0 + $0x20] ss:$8 sm:$0xf]   ;;  %v253_v42 = vld [vmem:[#allocation0 + $0x1] ss:$8 sm:$0xf0]  }
  0x18   :  { %156 = vrot.lane.b32.xlu2 %v155_v30, %s322_s23  ;;  %v226_v43 = vld [vmem:[#allocation0 + $0x20] ss:$8 sm:$0xf]   ;;  %v228_v44 = vld [vmem:[#allocation0 + $0x1] ss:$8 sm:$0xf0]   ;;  %v255_v47 = vsel %vm91_vm0, %v253_v42, %v251_v41 }
  0x19   :  { %v238_v45 = vld [vmem:[#allocation0] ss:$8 sm:$0xf]   ;;  %v240_v46 = vld [vmem:[#allocation0 - $0x1f] ss:$8 sm:$0xf0]   ;;  %v230_v48 = vsel %vm91_vm0, %v228_v44, %v226_v43 }
  0x1a   :  { %v242_v49 = vsel %vm91_vm0, %v240_v46, %v238_v45  ;;  %v34_v55 = vld [vmem:[#allocation0] sm:$0x3]   ;;  %271 = vst.msk [vmem:[%s552_s1 + $0x8] sm:$0x1] %vm35_vm1, %v40_v59   ;;  %v68_v3 = vld [vmem:[#allocation0 + $0x28] sm:$0x3]  }
  0x1b   :  { %36 = vst.msk [vmem:[%s552_s1] sm:$0x1] %vm35_vm1, %v34_v55   ;;  %v61_v2 = vld [vmem:[#allocation0 + $0x20] sm:$0x3]   ;;  %v75_v6 = vld [vmem:[#allocation0 + $0x30] sm:$0x3]  }
  0x1c   :  { %270 = vst.msk [vmem:[%s552_s1 + $0x3f] sm:$0x2] %vm35_vm1, %v34_v55   ;;  %v82_v7 = vld [vmem:[#allocation0 + $0x38] sm:$0x3]  }
  0x1d   :  { %272 = vst.msk [vmem:[%s552_s1 + $0x47] sm:$0x2] %vm35_vm1, %v40_v59  }
  0x1e   :  { %181 = vrot.lane.b32.xlu1 %v180_v29, %s323_s24  ;;  %274 = vst.msk [vmem:[%s552_s1 + $0x4f] sm:$0x2] %vm35_vm1, %v47_v62  }
  0x1f   :  { %168 = vrot.lane.b32.xlu0 %v167_v31, %s323_s24  ;;  %276 = vst.msk [vmem:[%s552_s1 + $0x57] sm:$0x2] %vm35_vm1, %v54_v63  }
  0x20   :  { %193 = vrot.lane.b32.xlu2 %v192_v39, %s325_s26  ;;  %277 = vst.msk [vmem:[%s552_s1 + $0x20] sm:$0x1] %vm35_vm1, %v61_v2  }
  0x21   :  { %278 = vst.msk [vmem:[%s552_s1 + $0x5f] sm:$0x2] %vm35_vm1, %v61_v2  }
  0x22   :  { %279 = vst.msk [vmem:[%s552_s1 + $0x28] sm:$0x1] %vm35_vm1, %v68_v3  }
  0x23   :  { %280 = vst.msk [vmem:[%s552_s1 + $0x67] sm:$0x2] %vm35_vm1, %v68_v3  }
  0x24   :  { %281 = vst.msk [vmem:[%s552_s1 + $0x30] sm:$0x1] %vm35_vm1, %v75_v6  }
  0x25   :  { %282 = vst.msk [vmem:[%s552_s1 + $0x6f] sm:$0x2] %vm35_vm1, %v75_v6  }
  0x26   :  { %218 = vrot.lane.b32.xlu1 %v217_v38, %s324_s25  ;;  %283 = vst.msk [vmem:[%s552_s1 + $0x38] sm:$0x1] %vm35_vm1, %v82_v7  }
  0x27   :  { %206 = vrot.lane.b32.xlu0 %v205_v40, %s325_s26  ;;  %284 = vst.msk [vmem:[%s552_s1 + $0x77] sm:$0x2] %vm35_vm1, %v82_v7  }
  0x28   :  { %231 = vrot.lane.b32.xlu2 %v230_v48, %s324_s25 }
  0x2e   :  { %256 = vrot.lane.b32.xlu1 %v255_v47, %s326_s27 }
  0x2f   :  { %243 = vrot.lane.b32.xlu0 %v242_v49, %s326_s27 }
  0x6a   :  { %v144_v50 = vpop.permute.xlu2 %143  }
  0x6b   :  { %293 = vst.msk [vmem:[%s552_s1 + $0x3] ss:$8 sm:$0xf] %vm35_vm1, %v144_v50  }
  0x6c   :  { %294 = vst.msk [vmem:[%s552_s1 + $0x23] ss:$8 sm:$0xf0] %vm35_vm1, %v144_v50  }
  0x72   :  { %v157_v51 = vpop.permute.xlu2 %156  }
  0x73   :  { %295 = vst.msk [vmem:[%s552_s1 + $0x23] ss:$8 sm:$0xf] %vm35_vm1, %v157_v51  }
  0x74   :  { %296 = vst.msk [vmem:[%s552_s1 + $0x43] ss:$8 sm:$0xf0] %vm35_vm1, %v157_v51  }
  0x7a   :  { %v194_v53 = vpop.permute.xlu2 %193  }
  0x7b   :  { %301 = vst.msk [vmem:[%s552_s1 + $0x5] ss:$8 sm:$0xf] %vm35_vm1, %v194_v53  }
  0x7c   :  { %302 = vst.msk [vmem:[%s552_s1 + $0x25] ss:$8 sm:$0xf0] %vm35_vm1, %v194_v53  }
  0x80   :  { %v119_v52 = vpop.permute.xlu1 %118  }
  0x81   :  { %289 = vst.msk [vmem:[%s552_s1 + $0x2] ss:$8 sm:$0xf] %vm35_vm1, %v119_v52   ;;  %v94_v54 = vpop.permute.xlu0 %93  }
  0x82   :  { %290 = vst.msk [vmem:[%s552_s1 + $0x22] ss:$8 sm:$0xf0] %vm35_vm1, %v119_v52   ;;  %v232_v57 = vpop.permute.xlu2 %231  }
  0x83   :  { %285 = vst.msk [vmem:[%s552_s1 + $0x1] ss:$8 sm:$0xf] %vm35_vm1, %v94_v54  }
  0x84   :  { %286 = vst.msk [vmem:[%s552_s1 + $0x21] ss:$8 sm:$0xf0] %vm35_vm1, %v94_v54  }
  0x85   :  { %307 = vst.msk [vmem:[%s552_s1 + $0x26] ss:$8 sm:$0xf] %vm35_vm1, %v232_v57  }
  0x86   :  { %308 = vst.msk [vmem:[%s552_s1 + $0x46] ss:$8 sm:$0xf0] %vm35_vm1, %v232_v57  }
  0x88   :  { %v132_v56 = vpop.permute.xlu1 %131  }
  0x89   :  { %291 = vst.msk [vmem:[%s552_s1 + $0x22] ss:$8 sm:$0xf] %vm35_vm1, %v132_v56   ;;  %v107_v58 = vpop.permute.xlu0 %106  }
  0x8a   :  { %292 = vst.msk [vmem:[%s552_s1 + $0x42] ss:$8 sm:$0xf0] %vm35_vm1, %v132_v56  }
  0x8b   :  { %287 = vst.msk [vmem:[%s552_s1 + $0x21] ss:$8 sm:$0xf] %vm35_vm1, %v107_v58  }
  0x8c   :  { %288 = vst.msk [vmem:[%s552_s1 + $0x41] ss:$8 sm:$0xf0] %vm35_vm1, %v107_v58  }
  0x90   :  { %v182_v60 = vpop.permute.xlu1 %181  }
  0x91   :  { %299 = vst.msk [vmem:[%s552_s1 + $0x24] ss:$8 sm:$0xf] %vm35_vm1, %v182_v60   ;;  %v169_v61 = vpop.permute.xlu0 %168  }
  0x92   :  { %300 = vst.msk [vmem:[%s552_s1 + $0x44] ss:$8 sm:$0xf0] %vm35_vm1, %v182_v60  }
  0x93   :  { %297 = vst.msk [vmem:[%s552_s1 + $0x4] ss:$8 sm:$0xf] %vm35_vm1, %v169_v61  }
  0x94   :  { %298 = vst.msk [vmem:[%s552_s1 + $0x24] ss:$8 sm:$0xf0] %vm35_vm1, %v169_v61  }
  0x98   :  { %v219_v0 = vpop.permute.xlu1 %218  }
  0x99   :  { %305 = vst.msk [vmem:[%s552_s1 + $0x6] ss:$8 sm:$0xf] %vm35_vm1, %v219_v0   ;;  %v207_v1 = vpop.permute.xlu0 %206  }
  0x9a   :  { %306 = vst.msk [vmem:[%s552_s1 + $0x26] ss:$8 sm:$0xf0] %vm35_vm1, %v219_v0  }
  0x9b   :  { %303 = vst.msk [vmem:[%s552_s1 + $0x25] ss:$8 sm:$0xf] %vm35_vm1, %v207_v1  }
  0x9c   :  { %304 = vst.msk [vmem:[%s552_s1 + $0x45] ss:$8 sm:$0xf0] %vm35_vm1, %v207_v1  }
  0xa0   :  { %v257_v4 = vpop.permute.xlu1 %256  }
  0xa1   :  { %311 = vst.msk [vmem:[%s552_s1 + $0x27] ss:$8 sm:$0xf] %vm35_vm1, %v257_v4   ;;  %v244_v5 = vpop.permute.xlu0 %243  }
  0xa2   :  { %312 = vst.msk [vmem:[%s552_s1 + $0x47] ss:$8 sm:$0xf0] %vm35_vm1, %v257_v4  }
  0xa3   :  { %309 = vst.msk [vmem:[%s552_s1 + $0x7] ss:$8 sm:$0xf] %vm35_vm1, %v244_v5  }
  0xa4   :  { %310 = vst.msk [vmem:[%s552_s1 + $0x27] ss:$8 sm:$0xf0] %vm35_vm1, %v244_v5  }

// kernel: custom-call.2
= control target key start
LH: loop header
LB: loop body
LE: loop exit
PB: predicated region body
PF: predicated region fallthrough
CT: control target
= control target key end

     0   :  { %s105_s0 = inlined_call_operand.vmem [shape: f32[2,4,16,16], index: 0, kind: input, shape index: {}]   ;;  %s106_s1 = inlined_call_operand.vmem [shape: f32[2,4,16,16], index: 1, kind: input, shape index: {}]   ;;  %s107_s2 = inlined_call_operand.hbm [shape: c64[2,4,16,16], index: 2, kind: output, shape index: {}]  }
   0x1   :  { %s3_s11 = scalar_lea.hbm %s107_s2, 128 }
   0x2   :  { %4 = vsyncpa [#allocation0], 0  ;;  %s6_s14 = sshll.u32 %s105_s0, 4  ;;  %s8_s17 = sshll.u32 %s107_s2, 4  ;;  %s7_s14 = int_to_ptr.vmem [resolvable:$true] %s6_s14  ;;  %s9_s17 = int_to_ptr.hbm [resolvable:$true] %s8_s17 }
   0x3   :  { %11 = dma.vmem_to_hbm [thread:$0]  %s7_s14, 2048, %s9_s17, [#allocation0] }
   0x4   :  { %74 = dma.done.wait [#allocation0], 2048  }
   0x5   :  { %75 = vsyncadd [#allocation0], 4294965248 }
   0x6   :  { %14 = vsyncpa [#allocation0], 1 }
   0x7   :  { %15 = vsyncpa [#allocation1], 0  ;;  %s17_s20 = sshll.u32 %s106_s1, 4  ;;  %s19_s21 = sshll.u32 %s3_s11, 4  ;;  %s18_s20 = int_to_ptr.vmem [resolvable:$true] %s17_s20  ;;  %s20_s21 = int_to_ptr.hbm [resolvable:$true] %s19_s21 }
   0x8   :  { %22 = dma.vmem_to_hbm [thread:$0]  %s18_s20, 2048, %s20_s21, [#allocation1] }
   0x9   :  { %76 = dma.done.wait [#allocation1], 2048  }
   0xa   :  { %77 = vsyncadd [#allocation1], 4294965248 }
   0xb   :  { %25 = vsyncpa [#allocation1], 1 }

// kernel: clip_act.1
= control target key start
LH: loop header
LB: loop body
LE: loop exit
PB: predicated region body
PF: predicated region fallthrough
CT: control target
= control target key end

     0   :  { %s397_s9 = smov 0   ;;  %s399_s10 = smov 0   ;;  %s429_s0 = inlined_call_operand.vmem [shape: f32[2,2,1024], index: 0, kind: input, shape index: {}]   ;;  %s430_s1 = inlined_call_operand.vmem [shape: f32[2,1024], index: 1, kind: input, shape index: {}]   ;;  %s431_s2 = inlined_call_operand.vmem [shape: f32[2,2,1024], index: 2, kind: output, shape index: {}]  }
   0x1   :  { %s401_s11 = smov 0  }
   0x2 LB: > { %s21_s12 = sadd.s32 1, %s376_s10  ;;  %p325_p0 = scmp.ge.s32.totalorder %s380_s11, 1  ;;  %s380_s11 = sphi %s401_s11, %s12_s11   ;;  %s376_s10 = sphi %s399_s10, %s433_s10   ;;  %s372_s9 = sphi %s397_s9, %s432_s9  }
   0x3   : > { %p22_p1 = scmp.ge.s32.totalorder %s21_s12, 2  ;;  %p142_p2 = scmp.lt.s32.totalorder %s380_s11, 3 }
   0x5   : > { %s435_s12 = smov (%p22_p1, %s21_s12), 0  ;;  %p143_p3 = pnand %p325_p0, %p142_p2 }
   0x6   : > { %p177_p4 = scmp.lt.s32.totalorder (!%p143_p3), %s372_s9, 1 }
   0x7   : > { %146 = sbr.rel (%p143_p3) target bundleno = 22 (0x16), region = 28 }
   0xc   : > { %v200_v0 = vld [vmem:[%s430_s1] sm:$0xff]  ;;  %v201_v1 = vld [vmem:[%s430_s1 + $0x8] sm:$0xff]  ;;  %s437_s9 = smov (!%p177_p4, %s372_s9), 1 }
   0xd   : > { %v204_v2 = vsub.f32 0.0, %v200_v0  ;;  %v205_v3 = vsub.f32 0.0, %v201_v1  ;;  %s332_s17 = sshll.u32 %s437_s9, 4 }
   0xe   : > { %s185_s20 = scalar_lea.vmem %s429_s0, %s332_s17  ;;  %s199_s23 = scalar_lea.vmem %s431_s2, %s332_s17 }
   0xf   : > { %v202_v4 = vld [vmem:[%s185_s20] sm:$0xff]  ;;  %v203_v5 = vld [vmem:[%s185_s20 + $0x8] sm:$0xff] }
  0x10   : > { %v206_v6 = vmax.f32 %v202_v4, %v204_v2  ;;  %v207_v7 = vmax.f32 %v203_v5, %v205_v3 }
  0x12   : > { %v208_v8 = vmin.f32 %v206_v6, %v200_v0  ;;  %v209_v9 = vmin.f32 %v207_v7, %v201_v1 }
  0x14   : > { %210 = vst [vmem:[%s199_s23] sm:$0xff] %v208_v8 }
  0x15   : > { %211 = vst [vmem:[%s199_s23 + $0x8] sm:$0xff] %v209_v9 }
  0x16 PF: > { %s12_s11 = sadd.s32 1, %s380_s11   ;;  %s432_s9 = smov %s376_s10 }
  0x17   : > { %p9_p5 = scmp.ge.s32.totalorder %s12_s11, 4   ;;  %s433_s10 = smov %s435_s12 }
  0x19   :  { %11 = sbr.rel (!%p9_p5) target bundleno = 2 (0x2), region = 61 }

</bundles_post_ra>
